<compile_context>
chip_gen: v7x
topology: tpu7x:2x2x1
jax: 0.10.0
libtpu: 0.0.40
codegen_flags: <defaults>
</compile_context>

<pallas_src>
import functools

import jax
import jax.numpy as jnp
from jax.experimental import pallas as pl
from jax.experimental.pallas import tpu as pltpu


# ----------------------------- Pallas kernel ------------------------------- #

def _affine_kernel(x_ref, s_ref, b_ref, o_ref, *, compute_dtype):
    """Fused affine: o = x * s + b.

    x_ref: (TR, TL) tile of the flattened activation (input dtype).
    s_ref/b_ref: either (TR, 1) per-row or (1, TL) per-lane factors, already in
    `compute_dtype`; broadcast happens in-register on the VPU.
    """
    x = x_ref[...].astype(compute_dtype)
    s = s_ref[...].astype(compute_dtype)
    b = b_ref[...].astype(compute_dtype)
    o_ref[...] = (x * s + b).astype(o_ref.dtype)


@functools.lru_cache(maxsize=1)
def _vmem_limit_bytes():
    """~3/4 of physical VMEM, capped at 96 MiB (v5e/v6e -> 96 MiB, v7x -> 48 MiB)."""
    try:
        cap = int(pltpu.get_tpu_info().vmem_capacity_bytes)
        return int(min(cap * 3 // 4, 96 * 1024 * 1024))
    except Exception:
        return 48 * 1024 * 1024  # safe default everywhere (v7x VMEM is 64 MiB/TC)


def _pick_tile(n, align, target):
    """Fixed aligned tile with a cdiv grid (trailing partial block is masked by
    Pallas), or the full dim when it already fits within the target.
    `target` must be a multiple of `align`."""
    del align  # documented: targets below are multiples of (8, 128)
    return n if n <= target else target


def _fused_affine_2d(x2, s2, b2, *, donate_input=False):
    """One HBM pass: o = x2 * s2 + b2.

    x2: (R, L) flattened activation. s2/b2: (R, 1) per-row or (1, L) per-lane
    factors in the compute dtype. Returns (R, L) in x2.dtype.
    """
    R, L = x2.shape
    compute_dtype = s2.dtype

    # ~8 MiB f32 tiles (4 MiB bf16); 2x in + 2x out double-buffers + factor
    # blocks stay under ~34 MiB, inside the 48 MiB v7x budget.
    TR = _pick_tile(R, 8, 512)       # sublane axis, OUTER grid dim
    TL = _pick_tile(L, 128, 4096)    # lane axis,   INNER grid dim
    grid = (pl.cdiv(R, TR), pl.cdiv(L, TL))

    if s2.shape[0] == R:             # per-row factors (R, 1)
        sb_block = (TR, 1)
        sb_map = lambda r, c: (r, 0)
    else:                            # per-lane factors (1, L)
        sb_block = (1, TL)
        sb_map = lambda r, c: (0, c)

    itemsize = int(jnp.dtype(x2.dtype).itemsize)
    cost = pl.CostEstimate(
        flops=2 * R * L,
        transcendentals=0,
        bytes_accessed=2 * R * L * itemsize
        + int((s2.size + b2.size) * jnp.dtype(s2.dtype).itemsize),
    )

    kernel = functools.partial(_affine_kernel, compute_dtype=compute_dtype)

    return pl.pallas_call(
        kernel,
        out_shape=jax.ShapeDtypeStruct((R, L), x2.dtype),
        grid=grid,
        in_specs=[
            pl.BlockSpec((TR, TL), lambda r, c: (r, c)),
            pl.BlockSpec(sb_block, sb_map),
            pl.BlockSpec(sb_block, sb_map),
        ],
        out_specs=pl.BlockSpec((TR, TL), lambda r, c: (r, c)),
        compiler_params=pltpu.CompilerParams(
            # Row axis outer / lane axis inner keeps the per-row factor block
            # index constant across inner steps (no redundant re-DMA).
            # TODO(synk): on v7x mark the row axis pltpu.CORE_PARALLEL (or use
            # core_map) to shard the stream across both TensorCores; needs a
            # reliable chip-version probe to stay portable to v5e/v6e.
            dimension_semantics=("parallel", "parallel"),
            vmem_limit_bytes=_vmem_limit_bytes(),
        ),
        cost_estimate=cost,
        # Donate x's HBM buffer when the caller no longer needs the pre-layer
        # activation (common in flow training loops).
        input_output_aliases=({0: 0} if donate_input else {}),
    )(x2, s2, b2)


# ------------------------- affine composition (JAX) ------------------------ #

def _normalize_logdet(logdet, batch):
    if logdet is None:
        return jnp.zeros((batch,), jnp.float32)
    logdet = jnp.asarray(logdet, jnp.float32)
    if logdet.ndim == 0:
        logdet = jnp.broadcast_to(logdet, (batch,))
    return logdet


def _compose_affine(exec_layers, inverse):
    """Compose per-channel affine flows (given in EXECUTION order) into
    (scale_c, bias_c, signed sum of log_scale).  All (C,)-sized plain-JAX math.

    Note: composing N layers in f32 changes rounding order vs. sequential
    application; error is negligible for shallow chains but grows with depth
    and extreme log_scale values.
    """
    C = exec_layers[0].log_scale.shape[0]
    scale = jnp.ones((C,), jnp.float32)
    bias = jnp.zeros((C,), jnp.float32)
    ls_sum = jnp.zeros((), jnp.float32)
    for layer in exec_layers:
        ls = layer.log_scale.astype(jnp.float32)
        b = layer.bias.astype(jnp.float32)
        if inverse:
            s = jnp.exp(-ls)
            t = -b * s
        else:
            s = jnp.exp(ls)
            t = b
        bias = bias * s + t
        scale = scale * s
        ls_sum = ls_sum + jnp.sum(ls)
    sign = -1.0 if inverse else 1.0
    return scale, bias, sign * ls_sum


def _apply_composed_affine(x, scale_c, bias_c, logdet, ls_sum_signed,
                           donate_input=False):
    B, C, H, W = x.shape
    HW = H * W
    # bf16 inputs compute natively in bf16 (v6e/v7x VPU); f32 stays f32.
    cdt = jnp.bfloat16 if x.dtype == jnp.bfloat16 else jnp.float32

    if HW >= 512 and HW % 128 == 0:
        # Row layout: lane axis is the (already dense) spatial dim.
        x2 = x.reshape(B * C, HW)
        s2 = jnp.broadcast_to(scale_c[None, :], (B, C)).reshape(B * C, 1).astype(cdt)
        b2 = jnp.broadcast_to(bias_c[None, :], (B, C)).reshape(B * C, 1).astype(cdt)
    else:
        # Lane-dense layout for small / unaligned H*W: fold channels into the
        # lane axis so stores stay wide and unmasked.
        x2 = x.reshape(B, C * HW)
        s2 = jnp.repeat(scale_c, HW)[None, :].astype(cdt)
        b2 = jnp.repeat(bias_c, HW)[None, :].astype(cdt)

    y2 = _fused_affine_2d(x2, s2, b2, donate_input=donate_input)
    y = y2.reshape(B, C, H, W)
    logdet = logdet + jnp.float32(HW) * ls_sum_signed  # x-independent, plain JAX
    return y, logdet


# ----------------------------- Flow modules -------------------------------- #

class Flow:
    """Mirror of the abstract PyTorch Flow base class."""

    def forward(self, x, logdet=0, factored=None, inverse=False):
        raise NotImplementedError

    def __call__(self, x, logdet=0, factored=None, inverse=False):
        return self.forward(x, logdet, factored, inverse=inverse)


class ActNormFlow(Flow):
    # TODO(synk): the reference Flow.forward is abstract; a concrete ActNorm-style
    # per-channel affine flow is used so the sequential container has a real
    # invertible hot path implemented by the Pallas kernel.
    def __init__(self, log_scale, bias):
        self.log_scale = log_scale  # (C,)
        self.bias = bias            # (C,)

    def forward(self, x, logdet=None, factored=None, inverse=False):
        factored = [] if factored is None else factored
        logdet = _normalize_logdet(logdet, x.shape[0])
        scale_c, bias_c, ls_signed = _compose_affine([self], inverse)
        x, logdet = _apply_composed_affine(x, scale_c, bias_c, logdet, ls_signed)
        return x, logdet, factored


class FlowSequential(Flow):
    """Semantic port of the PyTorch FlowSequential container.

    Contiguous runs of ActNormFlow (per-channel affine) layers are composed
    exactly and executed as ONE fused Pallas pass over x each (inverse=True
    composes the inverted layers in reverse order).  Non-affine layers and the
    debug path fall back to the original per-layer iteration.
    """

    def __init__(self, layers, debug=False):
        for layer in layers:
            assert isinstance(layer, Flow)
        self.layers = list(layers)
        self.debug = debug

    def forward(self, x, logdet=None, factored=None, inverse=False):
        factored = [] if factored is None else factored
        logdet = _normalize_logdet(logdet, x.shape[0])
        seq = self.layers[::1 - int(inverse) * 2]  # execution order

        if self.debug:
            for layer in seq:
                msg = 'Inverting' if inverse else 'Forwarding'
                print(f'[FlowSequential] {msg} {layer.__class__.__name__} layer -> '
                      f'x.shape: {x.shape}, len(factored): {len(factored)}')
                x, logdet, factored = layer(x, logdet, factored, inverse=inverse)
                print(f'                 Result -> x.shape: {x.shape}, '
                      f'len(factored): {len(factored)}')
            return (x, logdet, factored)

        i, n = 0, len(seq)
        while i < n:
            if isinstance(seq[i], ActNormFlow):
                j = i
                while j < n and isinstance(seq[j], ActNormFlow):
                    j += 1
                run = seq[i:j]  # already in execution order
                scale_c, bias_c, ls_signed = _compose_affine(run, inverse)
                x, logdet = _apply_composed_affine(x, scale_c, bias_c, logdet,
                                                   ls_signed)
                i = j
            else:
                x, logdet, factored = seq[i](x, logdet, factored, inverse=inverse)
                i += 1
        return (x, logdet, factored)


# --------------------------------- main ------------------------------------ #

def _reference(x, layers, inverse=False):
    """Pure-JAX per-layer reference."""
    B, C, H, W = x.shape
    ld = jnp.zeros((B,), jnp.float32)
    seq = layers[::-1] if inverse else layers
    for layer in seq:
        ls = layer.log_scale.astype(jnp.float32)
        b = layer.bias.astype(jnp.float32)
        if inverse:
            x = (x - b[None, :, None, None]) * jnp.exp(-ls)[None, :, None, None]
            ld = ld - float(H * W) * jnp.sum(ls)
        else:
            x = x * jnp.exp(ls)[None, :, None, None] + b[None, :, None, None]
            ld = ld + float(H * W) * jnp.sum(ls)
    return x, ld


if __name__ == "__main__":
    key = jax.random.PRNGKey(0)
    B, C, H, W = 2, 4, 16, 16
    n_layers = 3

    k_x, k_x2, *k_params = jax.random.split(key, 2 + 2 * n_layers)
    x = jax.random.normal(k_x, (B, C, H, W), dtype=jnp.float32)

    layers = []
    for li in range(n_layers):
        log_scale = 0.1 * jax.random.normal(k_params[2 * li], (C,), dtype=jnp.float32)
        bias = 0.1 * jax.random.normal(k_params[2 * li + 1], (C,), dtype=jnp.float32)
        layers.append(ActNormFlow(log_scale, bias))

    flow = FlowSequential(layers, debug=False)

    # Forward pass (single fused Pallas call over all layers; lane-dense layout
    # since H*W = 256 < 512).
    y, logdet, factored = flow(x, logdet=None, factored=[], inverse=False)
    y = jax.block_until_ready(y)
    logdet = jax.block_until_ready(logdet)

    y_ref, ld_ref = _reference(x, layers, inverse=False)
    assert jnp.allclose(y, y_ref, atol=1e-5, rtol=1e-5)
    assert jnp.allclose(logdet, ld_ref, atol=1e-4, rtol=1e-5)

    # Inverse pass should reconstruct x and cancel logdet.
    x_rec, logdet_rec, _ = flow(y, logdet=logdet, factored=factored, inverse=True)
    x_rec = jax.block_until_ready(x_rec)
    logdet_rec = jax.block_until_ready(logdet_rec)
    assert jnp.allclose(x_rec, x, atol=1e-4, rtol=1e-4)
    assert jnp.allclose(logdet_rec, jnp.zeros((B,), jnp.float32), atol=1e-3)

    # Second small shape exercising the per-row (B*C, H*W) layout (H*W >= 512).
    x_big = jax.random.normal(k_x2, (B, C, 32, 32), dtype=jnp.float32)
    y_big, ld_big, _ = flow(x_big, logdet=None, factored=[], inverse=False)
    y_big = jax.block_until_ready(y_big)
    y_big_ref, ld_big_ref = _reference(x_big, layers, inverse=False)
    assert jnp.allclose(y_big, y_big_ref, atol=1e-5, rtol=1e-5)
    assert jnp.allclose(ld_big, ld_big_ref, atol=1e-4, rtol=1e-5)

    print("KERNEL_OK")
</pallas_src>

<mosaic_0001>
module attributes {stable_mosaic.version = 11 : i64} {
  func.func @_affine_kernel(%arg0: i32, %arg1: i32, %arg2: memref<2x1024xf32, #tpu.memory_space<vmem>>, %arg3: memref<1x1024xf32, #tpu.memory_space<vmem>>, %arg4: memref<1x1024xf32, #tpu.memory_space<vmem>>, %arg5: memref<2x1024xf32, #tpu.memory_space<vmem>>) attributes {dimension_semantics = [#tpu.dimension_semantics<parallel>, #tpu.dimension_semantics<parallel>], iteration_bounds = array<i64: 1, 1>, scalar_prefetch = 0 : i64, scratch_operands = 0 : i64, tpu.core_type = #tpu.core_type<tc>, window_params = [{transform_indices = @transform_0, window_bounds = array<i64: 2, 1024>}, {transform_indices = @transform_1, window_bounds = array<i64: 1, 1024>}, {transform_indices = @transform_2, window_bounds = array<i64: 1, 1024>}, {transform_indices = @transform_3, window_bounds = array<i64: 2, 1024>}]} {
    %c0 = arith.constant 0 : index
    %c0_0 = arith.constant 0 : index
    %0 = vector.load %arg2[%c0, %c0_0] : memref<2x1024xf32, #tpu.memory_space<vmem>>, vector<2x1024xf32>
    %c0_1 = arith.constant 0 : index
    %c0_2 = arith.constant 0 : index
    %1 = vector.load %arg3[%c0_1, %c0_2] : memref<1x1024xf32, #tpu.memory_space<vmem>>, vector<1x1024xf32>
    %c0_3 = arith.constant 0 : index
    %c0_4 = arith.constant 0 : index
    %2 = vector.load %arg4[%c0_3, %c0_4] : memref<1x1024xf32, #tpu.memory_space<vmem>>, vector<1x1024xf32>
    %3 = vector.broadcast %1 : vector<1x1024xf32> to vector<2x1024xf32>
    %4 = arith.mulf %0, %3 : vector<2x1024xf32>
    %5 = vector.broadcast %2 : vector<1x1024xf32> to vector<2x1024xf32>
    %6 = arith.addf %4, %5 : vector<2x1024xf32>
    %c0_5 = arith.constant 0 : index
    %c0_6 = arith.constant 0 : index
    %7 = vector.load %arg5[%c0_5, %c0_6] : memref<2x1024xf32, #tpu.memory_space<vmem>>, vector<2x1024xf32>
    tpu.vector_store %arg5[%c0_5, %c0_6], %6 {strides = array<i32>} : memref<2x1024xf32, #tpu.memory_space<vmem>>, vector<2x1024xf32>,
    return
  }
  func.func @transform_0(%arg0: i32, %arg1: i32) -> (i32, i32) {
    %c0_i32 = arith.constant 0 : i32
    return %arg0, %arg1 : i32, i32
  }
  func.func @transform_1(%arg0: i32, %arg1: i32) -> (i32, i32) {
    %c0_i32 = arith.constant 0 : i32
    %c0_i32_0 = arith.constant 0 : i32
    return %c0_i32, %arg1 : i32, i32
  }
  func.func @transform_2(%arg0: i32, %arg1: i32) -> (i32, i32) {
    %c0_i32 = arith.constant 0 : i32
    %c0_i32_0 = arith.constant 0 : i32
    return %c0_i32, %arg1 : i32, i32
  }
  func.func @transform_3(%arg0: i32, %arg1: i32) -> (i32, i32) {
    %c0_i32 = arith.constant 0 : i32
    return %arg0, %arg1 : i32, i32
  }
}

</mosaic_0001>

<bundles_post_ra>
// kernel: tpu_custom_call.1
= control target key start
LH: loop header
LB: loop body
LE: loop exit
PB: predicated region body
PF: predicated region fallthrough
CT: control target
= control target key end

     0   :  { %8 = vsyncpa [#allocation3], 0  ;;  %s386_s0 = inlined_call_operand.hbm [shape: f32[2,1024], index: 0, kind: input, shape index: {}]   ;;  %s387_s1 = inlined_call_operand.hbm [shape: f32[1,1024], index: 1, kind: input, shape index: {}]   ;;  %s388_s2 = inlined_call_operand.hbm [shape: f32[1,1024], index: 2, kind: input, shape index: {}]   ;;  %s389_s3 = inlined_call_operand.hbm [shape: f32[2,1024], index: 3, kind: output, shape index: {}]  }
   0x1   :  { %9 = vsyncpa [#allocation6], 0 }
   0x2   :  { %10 = vsyncpa [#allocation4], 0  ;;  %s313_s12 = smov [#allocation5]   ;;  %s314_s14 = smov [#allocation2]  }
   0x3   :  { %s27_s13 = sshll.u32 %s313_s12, 4  ;;  %s17_s15 = sshll.u32 %s314_s14, 4  ;;  %s28_s13 = int_to_ptr.vmem [resolvable:$true] %s27_s13  ;;  %s18_s15 = int_to_ptr.vmem [resolvable:$true] %s17_s15 }
   0x4   :  { %s219_s18 = scalar_lea.hbm %s387_s1, 128 }
   0x5   :  { %p220_p0 = scmp.ne.s32.totalorder %s387_s1, %s219_s18  ;;  %p223_p1 = scmp.lt.u32.totalorder %s219_s18, %s387_s1 }
   0x7   :  { %p225_p2 = pnand %p223_p1, %p220_p0 }
   0x9   :  { %228 = shalt.err (!%p225_p2)
}
   0xa   :  { %s229_s23 = scalar_lea.vmem %s28_s13, 128  ;;  %p234_p4 = scmp.lt.s32.totalorder %s28_s13, %s28_s13 }
   0xb   :  { %p230_p3 = scmp.ne.s32.totalorder %s28_s13, %s229_s23  ;;  %p235_p5 = scmp.lt.s32.totalorder %s229_s23, %s229_s23 }
   0xd   :  { %p236_p6 = por %p235_p5, %p234_p4 }
   0xf   :  { %p237_p7 = pnand %p236_p6, %p230_p3 }
  0x11   :  { %240 = shalt.err (!%p237_p7)
}
  0x12   :  { %30 = dma.hbm_to_vmem [thread:$0]  %s387_s1, 128, %s28_s13, [#allocation6]  }
  0x13   :  { %s241_s28 = scalar_lea.hbm %s386_s0, 256 }
  0x14   :  { %p242_p8 = scmp.ne.s32.totalorder %s386_s0, %s241_s28  ;;  %p245_p9 = scmp.lt.u32.totalorder %s241_s28, %s386_s0 }
  0x16   :  { %p247_p10 = pnand %p245_p9, %p242_p8 }
  0x18   :  { %250 = shalt.err (!%p247_p10)
}
  0x19   :  { %s251_s6 = scalar_lea.vmem %s18_s15, 256  ;;  %p256_p12 = scmp.lt.s32.totalorder %s18_s15, %s18_s15 }
  0x1a   :  { %p252_p11 = scmp.ne.s32.totalorder %s18_s15, %s251_s6  ;;  %p257_p13 = scmp.lt.s32.totalorder %s251_s6, %s251_s6 }
  0x1c   :  { %p258_p0 = por %p257_p13, %p256_p12 }
  0x1e   :  { %p259_p1 = pnand %p258_p0, %p252_p11 }
  0x20   :  { %262 = shalt.err (!%p259_p1)
}
  0x21   :  { %20 = dma.hbm_to_vmem [thread:$0]  %s386_s0, 256, %s18_s15, [#allocation3]  }
  0x22   :  { %s315_s8 = smov [#allocation7]   ;;  %s263_s12 = scalar_lea.hbm %s388_s2, 128 }
  0x23   :  { %s37_s9 = sshll.u32 %s315_s8, 4  ;;  %p264_p2 = scmp.ne.s32.totalorder %s388_s2, %s263_s12  ;;  %s38_s9 = int_to_ptr.vmem [resolvable:$true] %s37_s9 }
  0x24   :  { %p267_p3 = scmp.lt.u32.totalorder %s263_s12, %s388_s2 }
  0x26   :  { %p269_p4 = pnand %p267_p3, %p264_p2 }
  0x28   :  { %272 = shalt.err (!%p269_p4)
}
  0x29   :  { %s273_s18 = scalar_lea.vmem %s38_s9, 128  ;;  %p278_p6 = scmp.lt.s32.totalorder %s38_s9, %s38_s9 }
  0x2a   :  { %p274_p5 = scmp.ne.s32.totalorder %s38_s9, %s273_s18  ;;  %p279_p7 = scmp.lt.s32.totalorder %s273_s18, %s273_s18 }
  0x2c   :  { %p280_p8 = por %p279_p7, %p278_p6 }
  0x2e   :  { %p281_p9 = pnand %p280_p8, %p274_p5 }
  0x30   :  { %284 = shalt.err (!%p281_p9)
}
  0x31   :  { %40 = dma.hbm_to_vmem [thread:$0]  %s388_s2, 128, %s38_s9, [#allocation6]  }
  0x32   :  { %307 = dma.done.wait [#allocation3], 256  }
  0x33   :  { %308 = vsyncadd [#allocation3], 4294967040 }
  0x34   :  { %309 = dma.done.wait [#allocation6], 256  }
  0x35   :  { %310 = vsyncadd [#allocation6], 4294967040  ;;  %v55_v0 = vlaneseq  ;;  %v316_v1 = vmov 1983009808   ;;  %v52_v11 = vld [vmem:[#allocation5] sm:$0xff]  ;;  %v53_v12 = vld [vmem:[#allocation7] sm:$0xff] }
  0x36   :  { %v90_v2 = vunpack.c.l.s4 %v316_v1  ;;  %v50_v36 = vld [vmem:[#allocation2] sm:$0xff]  ;;  %v51_v49 = vld [vmem:[#allocation2 + $0x8] sm:$0xff]  ;;  %s317_s2 = smov [#allocation8]  }
  0x37   :  { %v56_v3 = vshrl.u32 %v55_v0, 7  ;;  %s204_s19 = sshll.u32 %s317_s2, 4  ;;  %s205_s19 = int_to_ptr.vmem [resolvable:$true] %s204_s19 }
  0x38   :  { %v91_v4 = vunpack.c.0.s8 %v90_v2  ;;  %s285_s20 = scalar_lea.vmem %s205_s19, 256  ;;  %p290_p11 = scmp.lt.s32.totalorder %s205_s19, %s205_s19 }
  0x39   :  { %v57_v5 = vsub.s32 0, %v56_v3  ;;  %v61_v6 = vsub.s32 1, %v56_v3  ;;  %v65_v7 = vsub.s32 2, %v56_v3  ;;  %v69_v8 = vsub.s32 3, %v56_v3  ;;  %p286_p10 = scmp.ne.s32.totalorder %s205_s19, %s285_s20  ;;  %p291_p12 = scmp.lt.s32.totalorder %s285_s20, %s285_s20 }
  0x3a   :  { %v73_v9 = vsub.s32 4, %v56_v3  ;;  %v77_v10 = vsub.s32 5, %v56_v3  ;;  %v94_v13 = vsub.s32 %v91_v4, %v56_v3  ;;  %v81_v14 = vsub.s32 6, %v56_v3 }
  0x3b   :  { %v85_v15 = vsub.s32 7, %v56_v3  ;;  %v58_v16 = vrot.slane %v52_v11, %v57_v5  ;;  %v62_v17 = vrot.slane %v52_v11, %v61_v6  ;;  %v66_v18 = vrot.slane %v52_v11, %v65_v7  ;;  %p292_p13 = por %p291_p12, %p290_p11 }
  0x3c   :  { %v70_v19 = vrot.slane %v52_v11, %v69_v8  ;;  %v129_v20 = vrot.slane %v53_v12, %v57_v5  ;;  %v133_v21 = vrot.slane %v53_v12, %v61_v6  ;;  %v137_v22 = vrot.slane %v53_v12, %v65_v7 }
  0x3d   :  { %v141_v23 = vrot.slane %v53_v12, %v69_v8  ;;  %v87_v24 = vcombine.low %v58_v16, %v62_v17  ;;  %v74_v26 = vrot.slane %v52_v11, %v73_v9  ;;  %v78_v27 = vrot.slane %v52_v11, %v77_v10  ;;  %p293_p0 = pnand %p292_p13, %p286_p10 }
  0x3e   :  { %v88_v25 = vcombine.low %v66_v18, %v70_v19  ;;  %v158_v28 = vcombine.low %v129_v20, %v133_v21  ;;  %v82_v30 = vrot.slane %v52_v11, %v81_v14  ;;  %v86_v31 = vrot.slane %v52_v11, %v85_v15 }
  0x3f   :  { %v159_v29 = vcombine.low %v137_v22, %v141_v23  ;;  %v95_v32 = vrot.slane %v87_v24, %v94_v13  ;;  %v104_v34 = vcombine.low %v74_v26, %v78_v27  ;;  %v145_v35 = vrot.slane %v53_v12, %v73_v9 }
  0x40   :  { %v102_v33 = vrot.slane %v88_v25, %v94_v13  ;;  %v166_v37 = vrot.slane %v158_v28, %v94_v13  ;;  %v105_v39 = vcombine.low %v82_v30, %v86_v31  ;;  %v149_v40 = vrot.slane %v53_v12, %v77_v10 }
  0x41   :  { %v173_v38 = vrot.slane %v159_v29, %v94_v13  ;;  %v112_v42 = vrot.slane %v104_v34, %v94_v13  ;;  %v153_v43 = vrot.slane %v53_v12, %v81_v14  ;;  %v157_v44 = vrot.slane %v53_v12, %v85_v15 }
  0x42   :  { %v103_v41 = vcombine.low %v95_v32, %v102_v33  ;;  %v119_v46 = vrot.slane %v105_v39, %v94_v13  ;;  %v175_v47 = vcombine.low %v145_v35, %v149_v40 }
  0x43   :  { %v174_v45 = vcombine.low %v166_v37, %v173_v38  ;;  %v176_v50 = vcombine.low %v153_v43, %v157_v44 }
  0x44   :  { %v123_v48 = vmul.f32 %v103_v41, %v50_v36  ;;  %v120_v51 = vcombine.low %v112_v42, %v119_v46  ;;  %v183_v52 = vrot.slane %v175_v47, %v94_v13 }
  0x45   :  { %v190_v54 = vrot.slane %v176_v50, %v94_v13 }
  0x46   :  { %v194_v53 = vadd.f32 %v174_v45, %v123_v48  ;;  %v124_v55 = vmul.f32 %v120_v51, %v51_v49 }
  0x47   :  { %v191_v56 = vcombine.low %v183_v52, %v190_v54 }
  0x48   :  { %196 = vst [vmem:[#allocation8] sm:$0xff] %v194_v53 }
  0x49   :  { %v195_v57 = vadd.f32 %v191_v56, %v124_v55 }
  0x4b   :  { %197 = vst [vmem:[#allocation8 + $0x8] sm:$0xff] %v195_v57 }
  0x4c   :  { %296 = shalt.err (!%p293_p0)
}
  0x4d   :  { %s297_s23 = scalar_lea.hbm %s389_s3, 256 }
  0x4e   :  { %p298_p1 = scmp.ne.s32.totalorder %s389_s3, %s297_s23  ;;  %p301_p2 = scmp.lt.u32.totalorder %s297_s23, %s389_s3 }
  0x50   :  { %p303_p3 = pnand %p301_p2, %p298_p1 }
  0x52   :  { %306 = shalt.err (!%p303_p3)
}
  0x53   :  { %207 = dma.vmem_to_hbm [thread:$0]  %s205_s19, 256, %s389_s3, [#allocation4]  }
  0x54   :  { %311 = dma.done.wait [#allocation4], 256  }
  0x55   :  { %312 = vsyncadd [#allocation4], 4294967040 }
  0x56   :  { %211 = vsyncpa [#allocation3], 1 }
  0x57   :  { %212 = vsyncpa [#allocation6], 1 }
  0x58   :  { %213 = vsyncpa [#allocation4], 1 }

</bundles_post_ra>
